<compile_context>
chip_gen: v7x
topology: tpu7x:2x2x1
jax: 0.10.0
libtpu: 0.0.40
codegen_flags: <defaults>
</compile_context>

<pallas_src>
import functools

import jax
import jax.numpy as jnp
from jax.experimental import pallas as pl
from jax.experimental.pallas import tpu as pltpu

IN_FEATURES = 500
OUT_FEATURES = 10
_LANE = 128
_SUBLANE = 8


def _cdiv(a, b):
    return -(-a // b)


def _round_up(n, m):
    return ((n + m - 1) // m) * m


def _tpu_tile_policy():
    """Returns (tile_b_max, min_grid_steps) for the local TPU generation."""
    try:
        kind = jax.devices()[0].device_kind.lower()
    except Exception:  # pragma: no cover - defensive, e.g. no devices yet
        kind = ""
    if "v7" in kind or "7x" in kind:
        # v7x: big tiles to amortize per-step overhead against 3.2 TB/s HBM,
        # and keep >= 2 grid steps so both TensorCores get batch tiles.
        return 4096, 2
    # v5e / v6e: single TensorCore; 2048-row tiles (~10.5 MiB total budget)
    # fit comfortably under v5e's 16 MiB scoped-VMEM default.
    return 2048, 1


def _choose_tile_b(batch, tile_b_max, min_steps):
    steps = max(min_steps, _cdiv(batch, tile_b_max))
    tile_b = _round_up(_cdiv(batch, steps), _SUBLANE)
    tile_b = min(tile_b, _round_up(batch, _SUBLANE))
    return max(_SUBLANE, tile_b)


def _vmem_limit_bytes(tile_b, x_itemsize):
    # Lane-padded, double-buffered budget (generation-aware: the explicit limit
    # matters vs. v5e's 16 MiB scoped default; the cap keeps us well under
    # v7x's 64 MiB physical VMEM).
    k_pad = _round_up(IN_FEATURES, _LANE)    # 512 lanes
    n_pad = _round_up(OUT_FEATURES, _LANE)   # 128 lanes
    x_bytes = 2 * tile_b * k_pad * x_itemsize
    o_bytes = 2 * tile_b * n_pad * 4
    w_bytes = 2 * k_pad * n_pad * x_itemsize
    b_bytes = 2 * _SUBLANE * n_pad * 4
    budget = x_bytes + o_bytes + w_bytes + b_bytes
    # 25% + 2 MiB headroom for Mosaic internal scratch.
    return min(int(budget * 1.25) + (2 << 20), 48 << 20)


def _fc2_kernel(x_ref, w_ref, b_ref, o_ref):
    # x_ref: (TILE_B, 500), w_ref: (500, 10), b_ref: (1, 10), o_ref: (TILE_B, 10)
    # Feed operands at native dtype into the MXU; accumulate in f32.
    logits = jnp.dot(x_ref[...], w_ref[...], preferred_element_type=jnp.float32)
    logits = logits + b_ref[...].astype(jnp.float32)

    # Numerically-stable log-softmax along dim=-1 (all f32).
    m = jnp.max(logits, axis=-1, keepdims=True)
    shifted = logits - m
    lse = jnp.log(jnp.sum(jnp.exp(shifted), axis=-1, keepdims=True))
    o_ref[...] = (shifted - lse).astype(o_ref.dtype)


@functools.partial(jax.jit, static_argnames=("tile_b", "vmem_limit"))
def _fc2_pallas(x, w_t, b2d, *, tile_b, vmem_limit):
    batch = x.shape[0]
    grid = (_cdiv(batch, tile_b),)

    cost = pl.CostEstimate(
        flops=2 * batch * IN_FEATURES * OUT_FEATURES + 6 * batch * OUT_FEATURES,
        transcendentals=2 * batch * OUT_FEATURES,  # exp + log per output elem
        bytes_accessed=(batch * IN_FEATURES * x.dtype.itemsize
                        + IN_FEATURES * OUT_FEATURES * w_t.dtype.itemsize
                        + OUT_FEATURES * b2d.dtype.itemsize
                        + batch * OUT_FEATURES * x.dtype.itemsize),
    )

    return pl.pallas_call(
        _fc2_kernel,
        out_shape=jax.ShapeDtypeStruct((batch, OUT_FEATURES), x.dtype),
        grid=grid,
        in_specs=[
            # x: tiled over batch -> double-buffered DMA overlaps compute.
            pl.BlockSpec((tile_b, IN_FEATURES), lambda i: (i, 0)),
            # weight / bias: constant index_map -> resident across grid steps.
            pl.BlockSpec((IN_FEATURES, OUT_FEATURES), lambda i: (0, 0)),
            pl.BlockSpec((1, OUT_FEATURES), lambda i: (0, 0)),
        ],
        out_specs=pl.BlockSpec((tile_b, OUT_FEATURES), lambda i: (i, 0)),
        compiler_params=pltpu.CompilerParams(
            # Independent batch tiles: shardable across v7x's 2 TensorCores.
            dimension_semantics=("parallel",),
            vmem_limit_bytes=vmem_limit,
        ),
        cost_estimate=cost,
    )(x, w_t, b2d)


def fc2_forward(x, w_t, bias):
    """FC2 forward.

    x:    (B, 500) float32 (or bfloat16 for halved HBM traffic)
    w_t:  (500, 10) — PyTorch weight (10, 500) already transposed once.
    bias: (10,) float32
    returns (B, 10) log-probabilities.
    """
    batch = x.shape[0]
    tile_b_max, min_steps = _tpu_tile_policy()
    tile_b = _choose_tile_b(batch, tile_b_max, min_steps)
    vmem_limit = _vmem_limit_bytes(tile_b, x.dtype.itemsize)
    return _fc2_pallas(x, w_t, bias.reshape(1, OUT_FEATURES),
                       tile_b=tile_b, vmem_limit=vmem_limit)


def init_params(key):
    """Deterministic init mirroring nn.Linear default: U(-1/sqrt(fan_in), +...)."""
    kw, kb = jax.random.split(key)
    bound = 1.0 / (IN_FEATURES ** 0.5)
    weight = jax.random.uniform(
        kw, (OUT_FEATURES, IN_FEATURES), jnp.float32, -bound, bound)
    bias = jax.random.uniform(
        kb, (OUT_FEATURES,), jnp.float32, -bound, bound)
    return weight, bias


if __name__ == "__main__":
    key = jax.random.PRNGKey(0)
    k_x, k_p, k_x2 = jax.random.split(key, 3)

    weight, bias = init_params(k_p)       # PyTorch layout (10, 500)
    w_t = weight.T                        # transpose ONCE, outside the forward

    # Small batch (single tile).
    B = 8
    x = jax.random.normal(k_x, (B, IN_FEATURES), jnp.float32)
    out = jax.block_until_ready(fc2_forward(x, w_t, bias))
    ref = jax.nn.log_softmax(x @ weight.T + bias, axis=-1)
    assert out.shape == (B, OUT_FEATURES)
    assert jnp.allclose(out, ref, atol=1e-5, rtol=1e-5), "mismatch vs reference (B=8)"

    # Modest batch exercising the tiled / partial-last-tile path.
    B2 = 520
    x2 = jax.random.normal(k_x2, (B2, IN_FEATURES), jnp.float32)
    out2 = jax.block_until_ready(fc2_forward(x2, w_t, bias))
    ref2 = jax.nn.log_softmax(x2 @ weight.T + bias, axis=-1)
    assert out2.shape == (B2, OUT_FEATURES)
    assert jnp.allclose(out2, ref2, atol=1e-5, rtol=1e-5), "mismatch vs reference (B=520)"

    print("KERNEL_OK")
</pallas_src>

<mosaic_0001>
module attributes {stable_mosaic.version = 11 : i64} {
  func.func @_fc2_kernel(%arg0: i32, %arg1: memref<8x500xf32, #tpu.memory_space<vmem>>, %arg2: memref<500x10xf32, #tpu.memory_space<vmem>>, %arg3: memref<1x10xf32, #tpu.memory_space<vmem>>, %arg4: memref<8x10xf32, #tpu.memory_space<vmem>>) attributes {dimension_semantics = [#tpu.dimension_semantics<parallel>], iteration_bounds = array<i64: 1>, scalar_prefetch = 0 : i64, scratch_operands = 0 : i64, tpu.core_type = #tpu.core_type<tc>, window_params = [{transform_indices = @transform_0, window_bounds = array<i64: 8, 500>}, {pipeline_mode = #tpu.pipeline_mode<synchronous>, transform_indices = @transform_1, window_bounds = array<i64: 500, 10>}, {pipeline_mode = #tpu.pipeline_mode<synchronous>, transform_indices = @transform_2, window_bounds = array<i64: 1, 10>}, {transform_indices = @transform_3, window_bounds = array<i64: 8, 10>}]} {
    %c0 = arith.constant 0 : index
    %c0_0 = arith.constant 0 : index
    %0 = vector.load %arg1[%c0, %c0_0] : memref<8x500xf32, #tpu.memory_space<vmem>>, vector<8x500xf32>
    %c0_1 = arith.constant 0 : index
    %c0_2 = arith.constant 0 : index
    %1 = vector.load %arg2[%c0_1, %c0_2] : memref<500x10xf32, #tpu.memory_space<vmem>>, vector<500x10xf32>
    %cst = arith.constant dense<0.000000e+00> : vector<8x10xf32>
    %2 = tpu.matmul %0, %1, %cst {dimension_numbers = #tpu.dot_dimension_numbers<[1], [0], [0], [1], [0, 0, 1, 1], [], []>} : vector<8x500xf32>, vector<500x10xf32>, vector<8x10xf32> -> vector<8x10xf32>
    %c0_3 = arith.constant 0 : index
    %c0_4 = arith.constant 0 : index
    %3 = vector.load %arg3[%c0_3, %c0_4] : memref<1x10xf32, #tpu.memory_space<vmem>>, vector<1x10xf32>
    %4 = vector.broadcast %3 : vector<1x10xf32> to vector<8x10xf32>
    %5 = arith.addf %2, %4 : vector<8x10xf32>
    %cst_5 = arith.constant dense<0xFF800000> : vector<8xf32>
    %6 = vector.multi_reduction <maximumf>, %5, %cst_5 [1] : vector<8x10xf32> to vector<8xf32>
    %7 = vector.shape_cast %6 : vector<8xf32> to vector<8x1xf32>
    %8 = vector.broadcast %7 : vector<8x1xf32> to vector<8x10xf32>
    %9 = arith.subf %5, %8 : vector<8x10xf32>
    %10 = math.exp %9 : vector<8x10xf32>
    %cst_6 = arith.constant dense<0.000000e+00> : vector<8xf32>
    %11 = vector.multi_reduction <add>, %10, %cst_6 [1] : vector<8x10xf32> to vector<8xf32>
    %12 = vector.shape_cast %11 : vector<8xf32> to vector<8x1xf32>
    %13 = math.log %12 : vector<8x1xf32>
    %14 = vector.broadcast %13 : vector<8x1xf32> to vector<8x10xf32>
    %15 = arith.subf %9, %14 : vector<8x10xf32>
    %c0_7 = arith.constant 0 : index
    %c0_8 = arith.constant 0 : index
    %16 = vector.load %arg4[%c0_7, %c0_8] : memref<8x10xf32, #tpu.memory_space<vmem>>, vector<8x10xf32>
    tpu.vector_store %arg4[%c0_7, %c0_8], %15 {strides = array<i32>} : memref<8x10xf32, #tpu.memory_space<vmem>>, vector<8x10xf32>,
    return
  }
  func.func @transform_0(%arg0: i32) -> (i32, i32) {
    %c0_i32 = arith.constant 0 : i32
    %c0_i32_0 = arith.constant 0 : i32
    return %arg0, %c0_i32 : i32, i32
  }
  func.func @transform_1(%arg0: i32) -> (i32, i32) {
    %c0_i32 = arith.constant 0 : i32
    %c0_i32_0 = arith.constant 0 : i32
    %c0_i32_1 = arith.constant 0 : i32
    return %c0_i32, %c0_i32_0 : i32, i32
  }
  func.func @transform_2(%arg0: i32) -> (i32, i32) {
    %c0_i32 = arith.constant 0 : i32
    %c0_i32_0 = arith.constant 0 : i32
    %c0_i32_1 = arith.constant 0 : i32
    return %c0_i32, %c0_i32_0 : i32, i32
  }
  func.func @transform_3(%arg0: i32) -> (i32, i32) {
    %c0_i32 = arith.constant 0 : i32
    %c0_i32_0 = arith.constant 0 : i32
    return %arg0, %c0_i32 : i32, i32
  }
}

</mosaic_0001>

<bundles_post_ra>
// kernel: _fc2_pallas.1
= control target key start
LH: loop header
LB: loop body
LE: loop exit
PB: predicated region body
PF: predicated region fallthrough
CT: control target
= control target key end

     0   :  { %v411_v3 = vmov 0.0|0.0   ;;  %vm89_vm0 = vcmask 949248   ;;  %s668_s0 = inlined_call_operand.vmem [shape: f32[8,500], index: 0, kind: input, shape index: {}]   ;;  %s669_s1 = inlined_call_operand.vmem [shape: f32[500,10], index: 1, kind: input, shape index: {}]   ;;  %s670_s2 = inlined_call_operand.vmem [shape: f32[1,10], index: 2, kind: input, shape index: {}]   ;;  %s671_s3 = inlined_call_operand.hbm [shape: f32[8,10], index: 3, kind: output, shape index: {}]  }
   0x1   :  { %v51_v0 = vld [vmem:[%s669_s1 + $0x100] sm:$0xff]  ;;  %v52_v1 = vld [vmem:[%s669_s1 + $0x108] sm:$0xff]  ;;  %v53_v2 = vld [vmem:[%s669_s1 + $0x110] sm:$0xff]  ;;  %335 = vmatprep.subr.bf16.mxu1 %v411_v3 }
   0x2   :  { %v336_v4 = vpack.c.bf16 %v52_v1, %v51_v0  ;;  %v54_v5 = vld [vmem:[%s669_s1 + $0x118] sm:$0xff]  ;;  %v55_v7 = vld [vmem:[%s669_s1 + $0x120] sm:$0xff]  ;;  %v56_v8 = vld [vmem:[%s669_s1 + $0x128] sm:$0xff] }
   0x3   :  { %v339_v6 = vpack.c.bf16 %v54_v5, %v53_v2  ;;  %v35_v9 = vld [vmem:[%s669_s1 + $0x80] sm:$0xff]  ;;  %v36_v10 = vld [vmem:[%s669_s1 + $0x88] sm:$0xff]  ;;  %v37_v15 = vld [vmem:[%s669_s1 + $0x90] sm:$0xff]  ;;  %v342_v18 = vpack.c.bf16 %v56_v8, %v55_v7 }
   0x4   :  { %337 = vmatpush1.bf16.msra.mxu1 %v336_v4  ;;  %v19_v11 = vld [vmem:[%s669_s1] sm:$0xff]  ;;  %v303_v12 = vpack.c.bf16 %v36_v10, %v35_v9  ;;  %v20_v13 = vld [vmem:[%s669_s1 + $0x8] sm:$0xff]  ;;  %v38_v16 = vld [vmem:[%s669_s1 + $0x98] sm:$0xff] }
   0x5   :  { %338 = vmatprep.subr.bf16.mxu1 %v411_v3  ;;  %v305_v14 = vpack.c.bf16 %v20_v13, %v19_v11  ;;  %v21_v17 = vld [vmem:[%s669_s1 + $0x10] sm:$0xff]  ;;  %v307_v20 = vpack.c.bf16 %v38_v16, %v37_v15  ;;  %v22_v21 = vld [vmem:[%s669_s1 + $0x18] sm:$0xff]  ;;  %v39_v24 = vld [vmem:[%s669_s1 + $0xa0] sm:$0xff] }
   0x6   :  { %v57_v19 = vld [vmem:[%s669_s1 + $0x130] sm:$0xff]  ;;  %304 = vmatprep.subr.bf16.mxu0 %v303_v12  ;;  %v58_v22 = vld [vmem:[%s669_s1 + $0x138] sm:$0xff]  ;;  %v309_v23 = vpack.c.bf16 %v22_v21, %v21_v17  ;;  %v40_v25 = vld [vmem:[%s669_s1 + $0xa8] sm:$0xff] }
   0x7   :  { %306 = vmatpush3.bf16.msra.mxu0 %v305_v14  ;;  %v311_v26 = vpack.c.bf16 %v40_v25, %v39_v24  ;;  %v23_v27 = vld [vmem:[%s669_s1 + $0x20] sm:$0xff]  ;;  %v24_v28 = vld [vmem:[%s669_s1 + $0x28] sm:$0xff]  ;;  %v41_v29 = vld [vmem:[%s669_s1 + $0xb0] sm:$0xff]  ;;  %v345_v31 = vpack.c.bf16 %v58_v22, %v57_v19 }
   0x8   :  { %340 = vmatpush1.bf16.msra.mxu1 %v339_v6  ;;  %308 = vmatprep.subr.bf16.mxu0 %v307_v20  ;;  %v42_v30 = vld [vmem:[%s669_s1 + $0xb8] sm:$0xff]  ;;  %v59_v32 = vld [vmem:[%s669_s1 + $0x140] sm:$0xff]  ;;  %v60_v33 = vld [vmem:[%s669_s1 + $0x148] sm:$0xff]  ;;  %v313_v34 = vpack.c.bf16 %v24_v28, %v23_v27 }
   0x9   :  { %341 = vmatprep.subr.bf16.mxu1 %v411_v3  ;;  %v315_v35 = vpack.c.bf16 %v42_v30, %v41_v29  ;;  %v25_v36 = vld [vmem:[%s669_s1 + $0x30] sm:$0xff]  ;;  %v26_v37 = vld [vmem:[%s669_s1 + $0x38] sm:$0xff]  ;;  %v43_v38 = vld [vmem:[%s669_s1 + $0xc0] sm:$0xff]  ;;  %v348_v40 = vpack.c.bf16 %v60_v33, %v59_v32 }
   0xa   :  { %v44_v39 = vld [vmem:[%s669_s1 + $0xc8] sm:$0xff]  ;;  %v61_v41 = vld [vmem:[%s669_s1 + $0x150] sm:$0xff]  ;;  %v62_v42 = vld [vmem:[%s669_s1 + $0x158] sm:$0xff]  ;;  %v317_v43 = vpack.c.bf16 %v26_v37, %v25_v36 }
   0xb   :  { %310 = vmatpush3.bf16.msra.mxu0 %v309_v23  ;;  %v319_v44 = vpack.c.bf16 %v44_v39, %v43_v38  ;;  %v27_v45 = vld [vmem:[%s669_s1 + $0x40] sm:$0xff]  ;;  %v28_v46 = vld [vmem:[%s669_s1 + $0x48] sm:$0xff]  ;;  %v45_v47 = vld [vmem:[%s669_s1 + $0xd0] sm:$0xff]  ;;  %v351_v49 = vpack.c.bf16 %v62_v42, %v61_v41 }
   0xc   :  { %343 = vmatpush1.bf16.msra.mxu1 %v342_v18  ;;  %312 = vmatprep.subr.bf16.mxu0 %v311_v26  ;;  %v46_v48 = vld [vmem:[%s669_s1 + $0xd8] sm:$0xff]  ;;  %v63_v50 = vld [vmem:[%s669_s1 + $0x160] sm:$0xff]  ;;  %v64_v51 = vld [vmem:[%s669_s1 + $0x168] sm:$0xff]  ;;  %v321_v52 = vpack.c.bf16 %v28_v46, %v27_v45 }
   0xd   :  { %344 = vmatprep.subr.bf16.mxu1 %v411_v3  ;;  %v16_v53 = vld [vmem:[%s668_s0 + $0x8] sm:$0xff]  ;;  %v323_v54 = vpack.c.bf16 %v46_v48, %v45_v47  ;;  %v29_v55 = vld [vmem:[%s669_s1 + $0x50] sm:$0xff]  ;;  %v30_v56 = vld [vmem:[%s669_s1 + $0x58] sm:$0xff] }
   0xe   :  { %161 = vmatprep.mubr.f32.mxu0 %v16_v53  ;;  %v18_v57 = vld [vmem:[%s668_s0 + $0x18] sm:$0xff]  ;;  %v47_v58 = vld [vmem:[%s669_s1 + $0xe0] sm:$0xff]  ;;  %v48_v59 = vld [vmem:[%s669_s1 + $0xe8] sm:$0xff] }
   0xf   :  { %314 = vmatpush3.bf16.msra.mxu0 %v313_v34  ;;  %267 = vmatprep.mubr.msk.f32.mxu1 %vm89_vm0, %v18_v57 }
  0x10   :  { %346 = vmatpush1.bf16.msra.mxu1 %v345_v31  ;;  %316 = vmatprep.subr.bf16.mxu0 %v315_v35 }
  0x11   :  { %347 = vmatprep.subr.bf16.mxu1 %v411_v3 }
  0x13   :  { %318 = vmatpush3.bf16.msra.mxu0 %v317_v43 }
  0x14   :  { %349 = vmatpush1.bf16.msra.mxu1 %v348_v40  ;;  %320 = vmatprep.subr.bf16.mxu0 %v319_v44 }
  0x15   :  { %350 = vmatprep.subr.bf16.mxu1 %v411_v3 }
  0x16   :  { %8 = vsyncpa [#allocation3], 0  ;;  %v354_v60 = vpack.c.bf16 %v64_v51, %v63_v50  ;;  %v65_v61 = vld [vmem:[%s669_s1 + $0x170] sm:$0xff]  ;;  %v66_v62 = vld [vmem:[%s669_s1 + $0x178] sm:$0xff]  ;;  %v325_v63 = vpack.c.bf16 %v30_v56, %v29_v55  ;;  %v327_v0 = vpack.c.bf16 %v48_v59, %v47_v58  ;;  %v412_v34 = vmov 0.0  }
  0x17   :  { %322 = vmatpush3.bf16.msra.mxu0 %v321_v52  ;;  %v31_v1 = vld [vmem:[%s669_s1 + $0x60] sm:$0xff]  ;;  %v32_v2 = vld [vmem:[%s669_s1 + $0x68] sm:$0xff]  ;;  %v49_v4 = vld [vmem:[%s669_s1 + $0xf0] sm:$0xff]  ;;  %v357_v6 = vpack.c.bf16 %v66_v62, %v65_v61  ;;  %vm93_vm1 = vcmask 1043456   ;;  %vm237_vm2 = vcmask 80896  }
  0x18   :  { %352 = vmatpush1.bf16.msra.mxu1 %v351_v49  ;;  %324 = vmatprep.subr.bf16.mxu0 %v323_v54  ;;  %v50_v5 = vld [vmem:[%s669_s1 + $0xf8] sm:$0xff]  ;;  %v67_v7 = vld [vmem:[%s669_s1 + $0x180] sm:$0xff]  ;;  %v68_v8 = vld [vmem:[%s669_s1 + $0x188] sm:$0xff]  ;;  %v329_v9 = vpack.c.bf16 %v32_v2, %v31_v1 }
  0x19   :  { %353 = vmatprep.subr.bf16.mxu1 %v411_v3  ;;  %v331_v10 = vpack.c.bf16 %v50_v5, %v49_v4  ;;  %v33_v11 = vld [vmem:[%s669_s1 + $0x70] sm:$0xff]  ;;  %v34_v12 = vld [vmem:[%s669_s1 + $0x78] sm:$0xff]  ;;  %v360_v13 = vpack.c.bf16 %v68_v8, %v67_v7  ;;  %v71_v18 = vld [vmem:[%s669_s1 + $0x1a0] sm:$0xff] }
  0x1a   :  { %v69_v14 = vld [vmem:[%s669_s1 + $0x190] sm:$0xff]  ;;  %v70_v15 = vld [vmem:[%s669_s1 + $0x198] sm:$0xff]  ;;  %v333_v16 = vpack.c.bf16 %v34_v12, %v33_v11  ;;  %v72_v19 = vld [vmem:[%s669_s1 + $0x1a8] sm:$0xff] }
  0x1b   :  { %326 = vmatpush3.bf16.msra.mxu0 %v325_v63  ;;  %v363_v17 = vpack.c.bf16 %v70_v15, %v69_v14  ;;  %v15_v20 = vld [vmem:[%s668_s0] sm:$0xff]  ;;  %v366_v21 = vpack.c.bf16 %v72_v19, %v71_v18  ;;  %v73_v22 = vld [vmem:[%s669_s1 + $0x1b0] sm:$0xff]  ;;  %v74_v23 = vld [vmem:[%s669_s1 + $0x1b8] sm:$0xff] }
  0x1c   :  { %355 = vmatpush1.bf16.msra.mxu1 %v354_v60  ;;  %328 = vmatprep.subr.bf16.mxu0 %v327_v0  ;;  %v369_v24 = vpack.c.bf16 %v74_v23, %v73_v22  ;;  %v75_v25 = vld [vmem:[%s669_s1 + $0x1c0] sm:$0xff]  ;;  %v76_v26 = vld [vmem:[%s669_s1 + $0x1c8] sm:$0xff]  ;;  %v77_v28 = vld [vmem:[%s669_s1 + $0x1d0] sm:$0xff] }
  0x1d   :  { %356 = vmatprep.subr.bf16.mxu1 %v411_v3  ;;  %v372_v27 = vpack.c.bf16 %v76_v26, %v75_v25  ;;  %v78_v29 = vld [vmem:[%s669_s1 + $0x1d8] sm:$0xff]  ;;  %v79_v31 = vld [vmem:[%s669_s1 + $0x1e0] sm:$0xff]  ;;  %v80_v32 = vld [vmem:[%s669_s1 + $0x1e8] sm:$0xff] }
  0x1e   :  { %v375_v30 = vpack.c.bf16 %v78_v29, %v77_v28  ;;  %v378_v33 = vpack.c.bf16 %v80_v32, %v79_v31  ;;  %v81_v35 = vld [vmem:[%s669_s1 + $0x1f0] sm:$0xf] }
  0x1f   :  { %330 = vmatpush3.bf16.msra.mxu0 %v329_v9  ;;  %v17_v36 = vld [vmem:[%s668_s0 + $0x10] sm:$0xff]  ;;  %s413_s0 = smov [#allocation2]  }
  0x20   :  { %358 = vmatpush1.bf16.msra.mxu1 %v357_v6  ;;  %332 = vmatprep.subr.bf16.mxu0 %v331_v10  ;;  %s257_s1 = sshll.u32 %s413_s0, 4  ;;  %s258_s1 = int_to_ptr.vmem [resolvable:$true] %s257_s1 }
  0x21   :  { %359 = vmatprep.subr.bf16.mxu1 %v411_v3  ;;  %p392_p1 = scmp.lt.s32.totalorder %s258_s1, %s258_s1 }
  0x23   :  { %334 = vmatpush3.bf16.msra.mxu0 %v333_v16 }
  0x24   :  { %361 = vmatpush1.bf16.msra.mxu1 %v360_v13 }
  0x25   :  { %362 = vmatprep.subr.bf16.mxu1 %v411_v3 }
  0x26   :  { %162 = vmatmul.mubr.f32.vlgmr.msra.gmra.mrb[0].mxu0 %v15_v20 }
  0x28   :  { %364 = vmatpush1.bf16.msra.mxu1 %v363_v17 }
  0x29   :  { %365 = vmatprep.subr.bf16.mxu1 %v411_v3 }
  0x2c   :  { %367 = vmatpush1.bf16.msra.mxu1 %v366_v21 }
  0x2d   :  { %368 = vmatprep.subr.bf16.mxu1 %v411_v3 }
  0x30   :  { %370 = vmatpush1.bf16.msra.mxu1 %v369_v24 }
  0x31   :  { %371 = vmatprep.subr.bf16.mxu1 %v411_v3 }
  0x34   :  { %373 = vmatpush1.bf16.msra.mxu1 %v372_v27 }
  0x35   :  { %374 = vmatprep.subr.bf16.mxu1 %v411_v3 }
  0x38   :  { %376 = vmatpush1.bf16.msra.mxu1 %v375_v30 }
  0x39   :  { %377 = vmatprep.subr.bf16.mxu1 %v411_v3  ;;  %v265_v3 = vld [vmem:[%s670_s2] ss:$0 sm:$0xff]  ;;  %s387_s2 = scalar_lea.vmem %s258_s1, 128 }
  0x3a   :  { %p388_p0 = scmp.ne.s32.totalorder %s258_s1, %s387_s2  ;;  %p393_p2 = scmp.lt.s32.totalorder %s387_s2, %s387_s2 }
  0x3c   :  { %379 = vmatpush1.bf16.msra.mxu1 %v378_v33  ;;  %p394_p3 = por %p393_p2, %p392_p1 }
  0x3d   :  { %227 = vmatprep.subr.mxu1 %v412_v34 }
  0x3e   :  { %p395_p4 = pnand %p394_p3, %p388_p0 }
  0x40   :  { %266 = vmatpush1.msk.msra.mxu1 %vm93_vm1, %v81_v35 }
  0x41   :  { %232 = vmatmul.mubr.f32.vlgmr.msra.gmra.mrb[0].mxu1 %v17_v36 }
  0xf9   :  { %v300_v37 = vpop.f32.mrb[0].mxu0 }
  0xfa   :  { %v301_v38 = vpop.f32.mrb[1].mxu0 }
  0xfb   :  { %v302_v39 = vadd.f32 %v301_v38, %v300_v37 }
  0xfd   :  { %v164_v40 = vadd.f32 %v302_v39, %v265_v3 }
 0x114   :  { %v233_v41 = vpop.f32.mrb[0].mxu1 }
 0x115   :  { %v234_v42 = vadd.f32 %v233_v41, %v164_v40  ;;  %v235_v43 = vpop.f32.mrb[1].mxu1 }
 0x117   :  { %v238_v44 = vsel %vm237_vm2, %v234_v42, -inf }
 0x118   :  { %239 = vmax.xlane.f32.xlu0 %v238_v44 }
 0x1a5   :  { %v240_v45 = vpop.xlane.xlu0 %239 }
 0x1a6   :  { %v241_v46 = vsub.f32 %v234_v42, %v240_v45 }
 0x1a8   :  { %v242_v47 = vmul.f32 1.442695, %v241_v46 }
 0x1aa   :  { %383 = vpow2.f32 %v242_v47 }
 0x1b4   :  { %v384_v48 = vpop.eup %383 }
 0x1b5   :  { %v244_v49 = vsel %vm237_vm2, %v384_v48, 0.0 }
 0x1b6   :  { %245 = vadd.xlane.f32.xlu0 %v244_v49 }
 0x243   :  { %v246_v50 = vpop.xlane.xlu0 %245 }
 0x244   :  { %385 = vlog2.f32 %v246_v50 }
 0x24e   :  { %v386_v51 = vpop.eup %385 }
 0x24f   :  { %v248_v52 = vmul.f32 0.6931472, %v386_v51 }
 0x251   :  { %v249_v53 = vsub.f32 %v241_v46, %v248_v52 }
 0x253   :  { %250 = vst.msk [vmem:[#allocation2] sm:$0xff] %vm237_vm2, %v249_v53 }
 0x254   :  { %398 = shalt.err (!%p395_p4)
}
 0x255   :  { %s399_s15 = scalar_lea.hbm %s671_s3, 128 }
 0x256   :  { %p400_p5 = scmp.ne.s32.totalorder %s671_s3, %s399_s15  ;;  %p403_p6 = scmp.lt.u32.totalorder %s399_s15, %s671_s3 }
 0x258   :  { %p405_p7 = pnand %p403_p6, %p400_p5 }
 0x25a   :  { %408 = shalt.err (!%p405_p7)
}
 0x25b   :  { %260 = dma.vmem_to_hbm [thread:$0]  %s258_s1, 128, %s671_s3, [#allocation3]  }
 0x25c   :  { %409 = dma.done.wait [#allocation3], 128  }
 0x25d   :  { %410 = vsyncadd [#allocation3], 4294967168 }
 0x25e   :  { %264 = vsyncpa [#allocation3], 1 }

</bundles_post_ra>
